<compile_context>
chip_gen: v6e
topology: v6e:2x2x1
jax: 0.10.0
libtpu: 0.0.40
codegen_flags: <defaults>
</compile_context>

<pallas_src>
import jax
import jax.numpy as jnp
from jax.experimental import pallas as pl
from jax.experimental.pallas import tpu as pltpu


def transformer1_kernel(enc_ref, p_ref, g_ref, l2_ref,
                        w1f_ref, wpf_ref, wlf_ref, bg_ref, bl_ref,
                        out_ref):
    # enc path: dense_1 folded with dense_2 -> (TB, 2) on the MXU.
    cat2 = jnp.dot(enc_ref[...], w1f_ref[...],
                   preferred_element_type=jnp.float32)

    # fc_p path: K=3 contraction done as 3 broadcast mul-adds on the VPU
    # (avoids a degenerate (TB,3)@(3,2) MXU op).
    pw = wpf_ref[...]                                     # (3, 2)
    cat2 = (cat2
            + p_ref[:, 0:1] * pw[0:1, :]
            + p_ref[:, 1:2] * pw[1:2, :]
            + p_ref[:, 2:3] * pw[2:3, :]
            + bg_ref[...])

    # l path: l.sum(dim=1) folded into the contraction via the S-tiled weight.
    ll2 = jnp.dot(l2_ref[...], wlf_ref[...],
                  preferred_element_type=jnp.float32) + bl_ref[...]

    # Gate blend; dense_2 bias is already folded into both bias terms.
    g = g_ref[...]                                        # (TB,1) broadcasts over 2 lanes
    out_ref[...] = g * cat2 + (1.0 - g) * ll2


def make_params(key):
    """Deterministic synthetic parameters matching Transformer1.__init__ shapes."""
    ks = jax.random.split(key, 8)

    def lin(kw, kb, fan_in, fan_out):
        bound = 1.0 / jnp.sqrt(jnp.float32(fan_in))
        w = jax.random.uniform(kw, (fan_in, fan_out), jnp.float32, -bound, bound)
        b = jax.random.uniform(kb, (1, fan_out), jnp.float32, -bound, bound)
        return w, b

    w1, b1 = lin(ks[0], ks[1], 192, 16)   # dense_1
    wp, bp = lin(ks[2], ks[3], 3, 16)     # fc_p
    wl, bl = lin(ks[4], ks[5], 116, 32)   # l
    w2, b2 = lin(ks[6], ks[7], 32, 2)     # dense_2
    return dict(w1=w1, b1=b1, wp=wp, bp=bp, wl=wl, bl=bl, w2=w2, b2=b2)


def prepare_params(params, seq_len):
    """One-time weight folding (dense_2 absorbed into every path)."""
    w2 = params["w2"]                                       # (32, 2)
    w1f = params["w1"] @ w2[:16, :]                         # (192, 2)
    wpf = params["wp"] @ w2[16:, :]                         # (3, 2)
    wlf = jnp.tile(params["wl"] @ w2, (seq_len, 1))         # (S*116, 2)
    bg = params["b1"] @ w2[:16, :] + params["bp"] @ w2[16:, :] + params["b2"]
    bl = params["bl"] @ w2 + params["b2"]                   # (1, 2)
    return dict(w1f=w1f, wpf=wpf, wlf=wlf, bg=bg, bl=bl)


def _choose_block_b(B):
    """Batch block: >=2 grid blocks for large B (v7x megacore), VMEM-capped."""
    if B <= 8:
        return B
    tb = ((pl.cdiv(B, 2) + 7) // 8) * 8
    return min(2048, tb)   # ~19 MB double-buffered VMEM at TB=2048


def transformer1_forward(prepared, p, enc_inputs, g, f, l):
    del f  # `f` is accepted but never used in the reference forward
    B = enc_inputs.shape[0]
    S = l.shape[1]
    K_l = S * 116
    l2 = l.reshape(B, K_l)          # metadata-only reshape (no HBM copy)

    TB = _choose_block_b(B)
    grid = (pl.cdiv(B, TB),)

    batch_spec = lambda w: pl.BlockSpec((TB, w), lambda i: (i, 0))
    const_spec = lambda r, c: pl.BlockSpec((r, c), lambda i: (0, 0))

    cost = pl.CostEstimate(
        flops=2 * B * (192 * 2 + K_l * 2) + 16 * B,
        transcendentals=0,
        bytes_accessed=(B * (192 + 3 + 1 + K_l + 2) + (192 + 3 + K_l + 4) * 2) * 4,
    )

    return pl.pallas_call(
        transformer1_kernel,
        out_shape=jax.ShapeDtypeStruct((B, 2), jnp.float32),
        grid=grid,
        in_specs=[
            batch_spec(192),          # enc_inputs
            batch_spec(3),            # p
            batch_spec(1),            # g (gate)
            batch_spec(K_l),          # l flattened to (B, S*116)
            const_spec(192, 2),       # w1 @ w2[:16]
            const_spec(3, 2),         # wp @ w2[16:]
            const_spec(K_l, 2),       # tile(wl @ w2, S)
            const_spec(1, 2),         # (b1|bp) @ w2 + b2
            const_spec(1, 2),         # bl @ w2 + b2
        ],
        out_specs=batch_spec(2),
        compiler_params=pltpu.CompilerParams(
            dimension_semantics=("parallel",),
            vmem_limit_bytes=32 * 1024 * 1024),
        cost_estimate=cost,
    )(enc_inputs, p, g, l2,
      prepared["w1f"], prepared["wpf"], prepared["wlf"],
      prepared["bg"], prepared["bl"])


def transformer1_reference(params, p, enc_inputs, g, f, l):
    """Pure-JAX reference (mirrors the PyTorch forward) for validation."""
    x = enc_inputs @ params["w1"] + params["b1"]
    pp = p @ params["wp"] + params["bp"]
    ll = l.sum(axis=1) @ params["wl"] + params["bl"]
    f_o = g * jnp.concatenate([x, pp], axis=1) + (1.0 - g) * ll
    return f_o @ params["w2"] + params["b2"]


if __name__ == "__main__":
    key = jax.random.PRNGKey(0)
    k_par, k_data = jax.random.split(key)
    params = make_params(k_par)

    def run_case(k, B, S):
        kp, ke, kg, kf, kl = jax.random.split(k, 5)
        p = jax.random.normal(kp, (B, 3), jnp.float32)
        enc = jax.random.normal(ke, (B, 192), jnp.float32)
        g = jax.random.uniform(kg, (B, 1), jnp.float32)      # gate
        f = jax.random.normal(kf, (B, 4), jnp.float32)       # unused by forward
        l = jax.random.normal(kl, (B, S, 116), jnp.float32)

        prepared = prepare_params(params, S)                 # one-time weight prep
        out = jax.block_until_ready(
            transformer1_forward(prepared, p, enc, g, f, l))
        ref = transformer1_reference(params, p, enc, g, f, l)
        assert out.shape == (B, 2)
        err = float(jnp.max(jnp.abs(out - ref)))
        assert jnp.allclose(out, ref, atol=1e-4, rtol=1e-4), err
        return out

    k1, k2 = jax.random.split(k_data)
    run_case(k1, 8, 4)     # small single-block case
    run_case(k2, 20, 4)    # ragged multi-block case (grid=(2,), partial last block)

    print("KERNEL_OK")
</pallas_src>

<mosaic_0001>
module attributes {stable_mosaic.version = 11 : i64} {
  func.func @transformer1_kernel(%arg0: i32, %arg1: memref<8x192xf32, #tpu.memory_space<vmem>>, %arg2: memref<8x3xf32, #tpu.memory_space<vmem>>, %arg3: memref<8x1xf32, #tpu.memory_space<vmem>>, %arg4: memref<8x464xf32, #tpu.memory_space<vmem>>, %arg5: memref<192x2xf32, #tpu.memory_space<vmem>>, %arg6: memref<3x2xf32, #tpu.memory_space<vmem>>, %arg7: memref<464x2xf32, #tpu.memory_space<vmem>>, %arg8: memref<1x2xf32, #tpu.memory_space<vmem>>, %arg9: memref<1x2xf32, #tpu.memory_space<vmem>>, %arg10: memref<8x2xf32, #tpu.memory_space<vmem>>) attributes {dimension_semantics = [#tpu.dimension_semantics<parallel>], iteration_bounds = array<i64: 1>, scalar_prefetch = 0 : i64, scratch_operands = 0 : i64, tpu.core_type = #tpu.core_type<tc>, window_params = [{transform_indices = @transform_0, window_bounds = array<i64: 8, 192>}, {transform_indices = @transform_1, window_bounds = array<i64: 8, 3>}, {transform_indices = @transform_2, window_bounds = array<i64: 8, 1>}, {transform_indices = @transform_3, window_bounds = array<i64: 8, 464>}, {pipeline_mode = #tpu.pipeline_mode<synchronous>, transform_indices = @transform_4, window_bounds = array<i64: 192, 2>}, {pipeline_mode = #tpu.pipeline_mode<synchronous>, transform_indices = @transform_5, window_bounds = array<i64: 3, 2>}, {pipeline_mode = #tpu.pipeline_mode<synchronous>, transform_indices = @transform_6, window_bounds = array<i64: 464, 2>}, {pipeline_mode = #tpu.pipeline_mode<synchronous>, transform_indices = @transform_7, window_bounds = array<i64: 1, 2>}, {pipeline_mode = #tpu.pipeline_mode<synchronous>, transform_indices = @transform_8, window_bounds = array<i64: 1, 2>}, {transform_indices = @transform_9, window_bounds = array<i64: 8, 2>}]} {
    %c0 = arith.constant 0 : index
    %c0_0 = arith.constant 0 : index
    %0 = vector.load %arg1[%c0, %c0_0] : memref<8x192xf32, #tpu.memory_space<vmem>>, vector<8x192xf32>
    %c0_1 = arith.constant 0 : index
    %c0_2 = arith.constant 0 : index
    %1 = vector.load %arg5[%c0_1, %c0_2] : memref<192x2xf32, #tpu.memory_space<vmem>>, vector<192x2xf32>
    %cst = arith.constant dense<0.000000e+00> : vector<8x2xf32>
    %2 = tpu.matmul %0, %1, %cst {dimension_numbers = #tpu.dot_dimension_numbers<[1], [0], [0], [1], [0, 0, 1, 1], [], []>} : vector<8x192xf32>, vector<192x2xf32>, vector<8x2xf32> -> vector<8x2xf32>
    %c0_3 = arith.constant 0 : index
    %c0_4 = arith.constant 0 : index
    %3 = vector.load %arg6[%c0_3, %c0_4] : memref<3x2xf32, #tpu.memory_space<vmem>>, vector<3x2xf32>
    %c0_5 = arith.constant 0 : index
    %c0_6 = arith.constant 0 : index
    %4 = vector.load %arg2[%c0_5, %c0_6] : memref<8x3xf32, #tpu.memory_space<vmem>>, vector<8x1xf32>
    %5 = vector.extract_strided_slice %3 {offsets = [0, 0], sizes = [1, 2], strides = [1, 1]} : vector<3x2xf32> to vector<1x2xf32>
    %6 = vector.broadcast %4 : vector<8x1xf32> to vector<8x2xf32>
    %7 = vector.broadcast %5 : vector<1x2xf32> to vector<8x2xf32>
    %8 = arith.mulf %6, %7 : vector<8x2xf32>
    %9 = arith.addf %2, %8 : vector<8x2xf32>
    %c0_7 = arith.constant 0 : index
    %c1 = arith.constant 1 : index
    %10 = vector.load %arg2[%c0_7, %c1] : memref<8x3xf32, #tpu.memory_space<vmem>>, vector<8x1xf32>
    %11 = vector.extract_strided_slice %3 {offsets = [1, 0], sizes = [1, 2], strides = [1, 1]} : vector<3x2xf32> to vector<1x2xf32>
    %12 = vector.broadcast %10 : vector<8x1xf32> to vector<8x2xf32>
    %13 = vector.broadcast %11 : vector<1x2xf32> to vector<8x2xf32>
    %14 = arith.mulf %12, %13 : vector<8x2xf32>
    %15 = arith.addf %9, %14 : vector<8x2xf32>
    %c0_8 = arith.constant 0 : index
    %c2 = arith.constant 2 : index
    %16 = vector.load %arg2[%c0_8, %c2] : memref<8x3xf32, #tpu.memory_space<vmem>>, vector<8x1xf32>
    %17 = vector.extract_strided_slice %3 {offsets = [2, 0], sizes = [1, 2], strides = [1, 1]} : vector<3x2xf32> to vector<1x2xf32>
    %18 = vector.broadcast %16 : vector<8x1xf32> to vector<8x2xf32>
    %19 = vector.broadcast %17 : vector<1x2xf32> to vector<8x2xf32>
    %20 = arith.mulf %18, %19 : vector<8x2xf32>
    %21 = arith.addf %15, %20 : vector<8x2xf32>
    %c0_9 = arith.constant 0 : index
    %c0_10 = arith.constant 0 : index
    %22 = vector.load %arg8[%c0_9, %c0_10] : memref<1x2xf32, #tpu.memory_space<vmem>>, vector<1x2xf32>
    %23 = vector.broadcast %22 : vector<1x2xf32> to vector<8x2xf32>
    %24 = arith.addf %21, %23 : vector<8x2xf32>
    %c0_11 = arith.constant 0 : index
    %c0_12 = arith.constant 0 : index
    %25 = vector.load %arg4[%c0_11, %c0_12] : memref<8x464xf32, #tpu.memory_space<vmem>>, vector<8x464xf32>
    %c0_13 = arith.constant 0 : index
    %c0_14 = arith.constant 0 : index
    %26 = vector.load %arg7[%c0_13, %c0_14] : memref<464x2xf32, #tpu.memory_space<vmem>>, vector<464x2xf32>
    %cst_15 = arith.constant dense<0.000000e+00> : vector<8x2xf32>
    %27 = tpu.matmul %25, %26, %cst_15 {dimension_numbers = #tpu.dot_dimension_numbers<[1], [0], [0], [1], [0, 0, 1, 1], [], []>} : vector<8x464xf32>, vector<464x2xf32>, vector<8x2xf32> -> vector<8x2xf32>
    %c0_16 = arith.constant 0 : index
    %c0_17 = arith.constant 0 : index
    %28 = vector.load %arg9[%c0_16, %c0_17] : memref<1x2xf32, #tpu.memory_space<vmem>>, vector<1x2xf32>
    %29 = vector.broadcast %28 : vector<1x2xf32> to vector<8x2xf32>
    %30 = arith.addf %27, %29 : vector<8x2xf32>
    %c0_18 = arith.constant 0 : index
    %c0_19 = arith.constant 0 : index
    %31 = vector.load %arg3[%c0_18, %c0_19] : memref<8x1xf32, #tpu.memory_space<vmem>>, vector<8x1xf32>
    %32 = vector.broadcast %31 : vector<8x1xf32> to vector<8x2xf32>
    %33 = arith.mulf %32, %24 : vector<8x2xf32>
    %cst_20 = arith.constant 1.000000e+00 : f32
    %34 = vector.broadcast %cst_20 : f32 to vector<8x1xf32>
    %35 = arith.subf %34, %31 : vector<8x1xf32>
    %36 = vector.broadcast %35 : vector<8x1xf32> to vector<8x2xf32>
    %37 = arith.mulf %36, %30 : vector<8x2xf32>
    %38 = arith.addf %33, %37 : vector<8x2xf32>
    %c0_21 = arith.constant 0 : index
    %c0_22 = arith.constant 0 : index
    %39 = vector.load %arg10[%c0_21, %c0_22] : memref<8x2xf32, #tpu.memory_space<vmem>>, vector<8x2xf32>
    tpu.vector_store %arg10[%c0_21, %c0_22], %38 {strides = array<i32>} : memref<8x2xf32, #tpu.memory_space<vmem>>, vector<8x2xf32>,
    return
  }
  func.func @transform_0(%arg0: i32) -> (i32, i32) {
    %c0_i32 = arith.constant 0 : i32
    %c0_i32_0 = arith.constant 0 : i32
    return %arg0, %c0_i32 : i32, i32
  }
  func.func @transform_1(%arg0: i32) -> (i32, i32) {
    %c0_i32 = arith.constant 0 : i32
    %c0_i32_0 = arith.constant 0 : i32
    return %arg0, %c0_i32 : i32, i32
  }
  func.func @transform_2(%arg0: i32) -> (i32, i32) {
    %c0_i32 = arith.constant 0 : i32
    %c0_i32_0 = arith.constant 0 : i32
    return %arg0, %c0_i32 : i32, i32
  }
  func.func @transform_3(%arg0: i32) -> (i32, i32) {
    %c0_i32 = arith.constant 0 : i32
    %c0_i32_0 = arith.constant 0 : i32
    return %arg0, %c0_i32 : i32, i32
  }
  func.func @transform_4(%arg0: i32) -> (i32, i32) {
    %c0_i32 = arith.constant 0 : i32
    %c0_i32_0 = arith.constant 0 : i32
    %c0_i32_1 = arith.constant 0 : i32
    return %c0_i32, %c0_i32_0 : i32, i32
  }
  func.func @transform_5(%arg0: i32) -> (i32, i32) {
    %c0_i32 = arith.constant 0 : i32
    %c0_i32_0 = arith.constant 0 : i32
    %c0_i32_1 = arith.constant 0 : i32
    return %c0_i32, %c0_i32_0 : i32, i32
  }
  func.func @transform_6(%arg0: i32) -> (i32, i32) {
    %c0_i32 = arith.constant 0 : i32
    %c0_i32_0 = arith.constant 0 : i32
    %c0_i32_1 = arith.constant 0 : i32
    return %c0_i32, %c0_i32_0 : i32, i32
  }
  func.func @transform_7(%arg0: i32) -> (i32, i32) {
    %c0_i32 = arith.constant 0 : i32
    %c0_i32_0 = arith.constant 0 : i32
    %c0_i32_1 = arith.constant 0 : i32
    return %c0_i32, %c0_i32_0 : i32, i32
  }
  func.func @transform_8(%arg0: i32) -> (i32, i32) {
    %c0_i32 = arith.constant 0 : i32
    %c0_i32_0 = arith.constant 0 : i32
    %c0_i32_1 = arith.constant 0 : i32
    return %c0_i32, %c0_i32_0 : i32, i32
  }
  func.func @transform_9(%arg0: i32) -> (i32, i32) {
    %c0_i32 = arith.constant 0 : i32
    %c0_i32_0 = arith.constant 0 : i32
    return %arg0, %c0_i32 : i32, i32
  }
}

</mosaic_0001>

<bundles_post_ra>
// kernel: tpu_custom_call.1
= control target key start
LH: loop header
LB: loop body
LE: loop exit
PB: predicated region body
PF: predicated region fallthrough
CT: control target
= control target key end

     0   :  { %v454_v0 = vmov 0.0   ;;  %v455_v3 = vmov 0   ;;  %v456_v5 = vmov 2   ;;  %vm70_vm0 = vcmask 523264   ;;  %s843_s4 = inlined_call_operand.vmem [shape: f32[192,2], index: 4, kind: input, shape index: {}]   ;;  %s844_s6 = inlined_call_operand.vmem [shape: f32[464,2], index: 6, kind: input, shape index: {}]   ;;  %s845_s0 = inlined_call_operand.vmem [shape: f32[8,192], index: 0, kind: input, shape index: {}]   ;;  %s846_s3 = inlined_call_operand.vmem [shape: f32[8,464], index: 3, kind: input, shape index: {}]   ;;  %s847_s1 = inlined_call_operand.vmem [shape: f32[8,3], index: 1, kind: input, shape index: {}]   ;;  %s848_s2 = inlined_call_operand.vmem [shape: f32[8,1], index: 2, kind: input, shape index: {}]   ;;  %s849_s5 = inlined_call_operand.vmem [shape: f32[3,2], index: 5, kind: input, shape index: {}]   ;;  %s850_s7 = inlined_call_operand.vmem [shape: f32[1,2], index: 7, kind: input, shape index: {}]   ;;  %s851_s8 = inlined_call_operand.vmem [shape: f32[1,2], index: 8, kind: input, shape index: {}]   ;;  %s852_s9 = inlined_call_operand.vmem [shape: f32[8,2], index: 9, kind: output, shape index: {}]  }
   0x1   :  { %74 = vmatprep.subr.mxu0 %v454_v0  ;;  %v49_v1 = vld [vmem:[%s843_s4 + $0x78] sm:$0xff]  ;;  %v48_v2 = vld [vmem:[%s843_s4 + $0x70] sm:$0xff]  ;;  %315 = vmatprep.subr.mxu1 %v454_v0  ;;  %v47_v4 = vld [vmem:[%s843_s4 + $0x68] sm:$0xff]  ;;  %vm241_vm1 = vcmask 654336   ;;  %vm400_vm2 = vcmask 15360  }
   0x2   :  { %75 = vmatpush1.msra.mxu0 %v49_v1  ;;  %449 = vset.pattern.permute.xlu0 %v455_v3  ;;  %v46_v6 = vld [vmem:[%s843_s4 + $0x60] sm:$0xff]  ;;  %v223_v7 = vld [vmem:[%s844_s6 + $0x178] sm:$0xff]  ;;  %v222_v9 = vld [vmem:[%s844_s6 + $0x170] sm:$0xff] }
   0x3   :  { %76 = vmatprep.subr.mxu0 %v454_v0  ;;  %451 = vset.pattern.permute.xlu1 %v456_v5  ;;  %v45_v8 = vld [vmem:[%s843_s4 + $0x58] sm:$0xff]  ;;  %v221_v10 = vld [vmem:[%s844_s6 + $0x168] sm:$0xff]  ;;  %v44_v11 = vld [vmem:[%s843_s4 + $0x50] sm:$0xff] }
   0x4   :  { %77 = vmatpush1.msra.mxu0 %v48_v2  ;;  %316 = vmatpush1.msra.mxu1 %v223_v7  ;;  %v220_v12 = vld [vmem:[%s844_s6 + $0x160] sm:$0xff]  ;;  %v43_v13 = vld [vmem:[%s843_s4 + $0x48] sm:$0xff]  ;;  %v219_v14 = vld [vmem:[%s844_s6 + $0x158] sm:$0xff] }
   0x5   :  { %78 = vmatprep.subr.mxu0 %v454_v0  ;;  %317 = vmatprep.subr.mxu1 %v454_v0  ;;  %v42_v15 = vld [vmem:[%s843_s4 + $0x40] sm:$0xff]  ;;  %v218_v16 = vld [vmem:[%s844_s6 + $0x150] sm:$0xff]  ;;  %v41_v17 = vld [vmem:[%s843_s4 + $0x38] sm:$0xff] }
   0x6   :  { %79 = vmatpush1.msra.mxu0 %v47_v4  ;;  %318 = vmatpush1.msra.mxu1 %v222_v9  ;;  %v217_v18 = vld [vmem:[%s844_s6 + $0x148] sm:$0xff]  ;;  %v40_v19 = vld [vmem:[%s843_s4 + $0x30] sm:$0xff]  ;;  %v216_v22 = vld [vmem:[%s844_s6 + $0x140] sm:$0xff] }
   0x7   :  { %80 = vmatprep.subr.mxu0 %v454_v0  ;;  %319 = vmatprep.subr.mxu1 %v454_v0  ;;  %v33_v20 = vld [vmem:[%s845_s0 + $0x8] sm:$0xff]  ;;  %v38_v23 = vld [vmem:[%s843_s4 + $0x20] sm:$0xff]  ;;  %v215_v24 = vld [vmem:[%s844_s6 + $0x138] sm:$0xff] }
   0x8   :  { %81 = vmatpush1.msra.mxu0 %v46_v6  ;;  %320 = vmatpush1.msra.mxu1 %v221_v10  ;;  %v39_v21 = vld [vmem:[%s843_s4 + $0x28] sm:$0xff]  ;;  %v37_v25 = vld [vmem:[%s843_s4 + $0x18] sm:$0xff]  ;;  %v214_v26 = vld [vmem:[%s844_s6 + $0x130] sm:$0xff] }
   0x9   :  { %82 = vmatprep.subr.mxu0 %v454_v0  ;;  %321 = vmatprep.subr.mxu1 %v454_v0  ;;  %v36_v27 = vld [vmem:[%s843_s4 + $0x10] sm:$0xff]  ;;  %v213_v28 = vld [vmem:[%s844_s6 + $0x128] sm:$0xff]  ;;  %v212_v30 = vld [vmem:[%s844_s6 + $0x120] sm:$0xff] }
   0xa   :  { %83 = vmatpush1.msra.mxu0 %v45_v8  ;;  %322 = vmatpush1.msra.mxu1 %v220_v12  ;;  %v35_v29 = vld [vmem:[%s843_s4 + $0x8] sm:$0xff]  ;;  %v34_v31 = vld [vmem:[%s843_s4] sm:$0xff]  ;;  %v211_v32 = vld [vmem:[%s844_s6 + $0x118] sm:$0xff] }
   0xb   :  { %84 = vmatprep.subr.mxu0 %v454_v0  ;;  %323 = vmatprep.subr.mxu1 %v454_v0  ;;  %v57_v33 = vld [vmem:[%s843_s4 + $0xb8] sm:$0xff]  ;;  %v210_v34 = vld [vmem:[%s844_s6 + $0x110] sm:$0xff]  ;;  %v209_v36 = vld [vmem:[%s844_s6 + $0x108] sm:$0xff] }
   0xc   :  { %85 = vmatpush1.msra.mxu0 %v44_v11  ;;  %324 = vmatpush1.msra.mxu1 %v219_v14  ;;  %v56_v35 = vld [vmem:[%s843_s4 + $0xb0] sm:$0xff]  ;;  %v55_v37 = vld [vmem:[%s843_s4 + $0xa8] sm:$0xff]  ;;  %v208_v38 = vld [vmem:[%s844_s6 + $0x100] sm:$0xff] }
   0xd   :  { %86 = vmatprep.subr.mxu0 %v454_v0  ;;  %325 = vmatprep.subr.mxu1 %v454_v0  ;;  %v54_v39 = vld [vmem:[%s843_s4 + $0xa0] sm:$0xff]  ;;  %v233_v40 = vld [vmem:[%s844_s6 + $0x1c8] sm:$0xff]  ;;  %v53_v41 = vld [vmem:[%s843_s4 + $0x98] sm:$0xff] }
   0xe   :  { %87 = vmatpush1.msra.mxu0 %v43_v13  ;;  %326 = vmatpush1.msra.mxu1 %v218_v16  ;;  %v232_v42 = vld [vmem:[%s844_s6 + $0x1c0] sm:$0xff]  ;;  %v52_v43 = vld [vmem:[%s843_s4 + $0x90] sm:$0xff]  ;;  %v231_v44 = vld [vmem:[%s844_s6 + $0x1b8] sm:$0xff] }
   0xf   :  { %88 = vmatprep.subr.mxu0 %v454_v0  ;;  %327 = vmatprep.subr.mxu1 %v454_v0  ;;  %v51_v45 = vld [vmem:[%s843_s4 + $0x88] sm:$0xff]  ;;  %v230_v46 = vld [vmem:[%s844_s6 + $0x1b0] sm:$0xff]  ;;  %v50_v47 = vld [vmem:[%s843_s4 + $0x80] sm:$0xff] }
  0x10   :  { %89 = vmatpush1.msra.mxu0 %v42_v15  ;;  %328 = vmatpush1.msra.mxu1 %v217_v18  ;;  %v229_v48 = vld [vmem:[%s844_s6 + $0x1a8] sm:$0xff]  ;;  %v32_v49 = vld [vmem:[%s845_s0] sm:$0xff]  ;;  %v207_v50 = vld [vmem:[%s844_s6 + $0xf8] sm:$0xff]  ;;  %v457_v18 = vmov 1  }
  0x11   :  { %90 = vmatprep.subr.mxu0 %v454_v0  ;;  %329 = vmatprep.subr.mxu1 %v454_v0  ;;  %v191_v51 = vld [vmem:[%s844_s6 + $0x78] sm:$0xff]  ;;  %v206_v52 = vld [vmem:[%s844_s6 + $0xf0] sm:$0xff]  ;;  %v228_v53 = vld [vmem:[%s844_s6 + $0x1a0] sm:$0xff] }
  0x12   :  { %91 = vmatpush1.msra.mxu0 %v41_v17  ;;  %406 = vmatprep.mubr.msk.f32.mxu0 %vm70_vm0, %v33_v20  ;;  %v190_v54 = vld [vmem:[%s844_s6 + $0x70] sm:$0xff]  ;;  %v205_v55 = vld [vmem:[%s844_s6 + $0xe8] sm:$0xff]  ;;  %v227_v56 = vld [vmem:[%s844_s6 + $0x198] sm:$0xff] }
  0x13   :  { %92 = vmatprep.subr.mxu0 %v454_v0  ;;  %330 = vmatpush1.msra.mxu1 %v216_v22  ;;  %v189_v57 = vld [vmem:[%s844_s6 + $0x68] sm:$0xff]  ;;  %v204_v58 = vld [vmem:[%s844_s6 + $0xe0] sm:$0xff]  ;;  %v226_v61 = vld [vmem:[%s844_s6 + $0x190] sm:$0xff] }
  0x14   :  { %93 = vmatpush1.msra.mxu0 %v40_v19  ;;  %331 = vmatprep.subr.mxu1 %v454_v0  ;;  %v173_v59 = vld [vmem:[%s846_s3 + $0x8] sm:$0xff]  ;;  %v188_v60 = vld [vmem:[%s844_s6 + $0x60] sm:$0xff]  ;;  %v203_v62 = vld [vmem:[%s844_s6 + $0xd8] sm:$0xff] }
  0x15   :  { %94 = vmatprep.subr.mxu0 %v454_v0  ;;  %332 = vmatpush1.msra.mxu1 %v215_v24  ;;  %v187_v63 = vld [vmem:[%s844_s6 + $0x58] sm:$0xff]  ;;  %v225_v1 = vld [vmem:[%s844_s6 + $0x188] sm:$0xff]  ;;  %v202_v2 = vld [vmem:[%s844_s6 + $0xd0] sm:$0xff] }
  0x16   :  { %95 = vmatpush1.msra.mxu0 %v39_v21  ;;  %333 = vmatprep.subr.mxu1 %v454_v0  ;;  %v186_v4 = vld [vmem:[%s844_s6 + $0x50] sm:$0xff]  ;;  %v224_v5 = vld [vmem:[%s844_s6 + $0x180] sm:$0xff]  ;;  %v201_v6 = vld [vmem:[%s844_s6 + $0xc8] sm:$0xff] }
  0x17   :  { %96 = vmatprep.subr.mxu0 %v454_v0  ;;  %334 = vmatpush1.msra.mxu1 %v214_v26  ;;  %v175_v7 = vld [vmem:[%s846_s3 + $0x18] sm:$0xff]  ;;  %v185_v8 = vld [vmem:[%s844_s6 + $0x48] sm:$0xff]  ;;  %v174_v9 = vld [vmem:[%s846_s3 + $0x10] sm:$0xff] }
  0x18   :  { %97 = vmatpush1.msra.mxu0 %v38_v23  ;;  %335 = vmatprep.subr.mxu1 %v454_v0  ;;  %v200_v10 = vld [vmem:[%s844_s6 + $0xc0] sm:$0xff]  ;;  %v183_v13 = vld [vmem:[%s844_s6 + $0x38] sm:$0xff]  ;;  %v198_v14 = vld [vmem:[%s844_s6 + $0xb0] sm:$0xff] }
  0x19   :  { %98 = vmatprep.subr.mxu0 %v454_v0  ;;  %336 = vmatpush1.msra.mxu1 %v213_v28  ;;  %v59_v11 = vld [vmem:[%s847_s1] sm:$0xff]  ;;  %v182_v15 = vld [vmem:[%s844_s6 + $0x30] sm:$0xff]  ;;  %v197_v16 = vld [vmem:[%s844_s6 + $0xa8] sm:$0xff] }
  0x1a   :  { %99 = vmatpush1.msra.mxu0 %v37_v25  ;;  %337 = vmatprep.subr.mxu1 %v454_v0  ;;  %v184_v12 = vld [vmem:[%s844_s6 + $0x40] sm:$0xff]  ;;  %v181_v17 = vld [vmem:[%s844_s6 + $0x28] sm:$0xff]  ;;  %v195_v22 = vld [vmem:[%s844_s6 + $0x98] sm:$0xff] }
  0x1b   :  { %100 = vmatprep.subr.mxu0 %v454_v0  ;;  %338 = vmatpush1.msra.mxu1 %v212_v30  ;;  %v385_v19 = vld [vmem:[%s848_s2] sm:$0xff]  ;;  %v179_v24 = vld [vmem:[%s844_s6 + $0x18] sm:$0xff]  ;;  %v194_v25 = vld [vmem:[%s844_s6 + $0x90] sm:$0xff] }
  0x1c   :  { %101 = vmatpush1.msra.mxu0 %v36_v27  ;;  %339 = vmatprep.subr.mxu1 %v454_v0  ;;  %v196_v20 = vld [vmem:[%s844_s6 + $0xa0] sm:$0xff]  ;;  %v392_v23 = vsub.f32 1.0, %v385_v19  ;;  %v178_v26 = vld [vmem:[%s844_s6 + $0x10] sm:$0xff]  ;;  %v193_v27 = vld [vmem:[%s844_s6 + $0x88] sm:$0xff] }
  0x1d   :  { %102 = vmatprep.subr.mxu0 %v454_v0  ;;  %340 = vmatpush1.msra.mxu1 %v211_v32  ;;  %v180_v21 = vld [vmem:[%s844_s6 + $0x20] sm:$0xff]  ;;  %v177_v28 = vld [vmem:[%s844_s6 + $0x8] sm:$0xff] }
  0x1e   :  { %103 = vmatpush1.msra.mxu0 %v35_v29  ;;  %341 = vmatprep.subr.mxu1 %v454_v0  ;;  %v176_v29 = vld [vmem:[%s844_s6] sm:$0xff] }
  0x1f   :  { %104 = vmatprep.subr.mxu0 %v454_v0  ;;  %342 = vmatpush1.msra.mxu1 %v210_v34  ;;  %v172_v30 = vld [vmem:[%s846_s3] sm:$0xff] }
  0x20   :  { %105 = vmatpush1.msra.mxu0 %v34_v31  ;;  %343 = vmatprep.subr.mxu1 %v454_v0 }
  0x21   :  { %122 = vmatprep.subr.mxu0 %v454_v0  ;;  %344 = vmatpush1.msra.mxu1 %v209_v36 }
  0x22   :  { %123 = vmatpush2.msra.mxu0 %v57_v33  ;;  %345 = vmatprep.subr.mxu1 %v454_v0  ;;  %v65_v33 = vlaneseq }
  0x23   :  { %124 = vmatprep.subr.mxu0 %v454_v0  ;;  %346 = vmatpush1.msra.mxu1 %v208_v38 }
  0x24   :  { %125 = vmatpush2.msra.mxu0 %v56_v35  ;;  %359 = vmatprep.subr.mxu1 %v454_v0  ;;  %v66_v34 = vshrl.u32 %v65_v33, 7 }
  0x25   :  { %126 = vmatprep.subr.mxu0 %v454_v0  ;;  %360 = vmatpush2.msra.mxu1 %v233_v40 }
  0x26   :  { %127 = vmatpush2.msra.mxu0 %v55_v37  ;;  %361 = vmatprep.subr.mxu1 %v454_v0  ;;  %v67_v35 = vsub.s32 0, %v66_v34  ;;  %v58_v37 = vld [vmem:[%s849_s5] sm:$0x7] }
  0x27   :  { %128 = vmatprep.subr.mxu0 %v454_v0  ;;  %362 = vmatpush2.msra.mxu1 %v232_v42 }
  0x28   :  { %129 = vmatpush2.msra.mxu0 %v54_v39  ;;  %363 = vmatprep.subr.mxu1 %v454_v0  ;;  %v68_v40 = vrot.slane %v58_v37, %v67_v35 }
  0x29   :  { %130 = vmatprep.subr.mxu0 %v454_v0  ;;  %364 = vmatpush2.msra.mxu1 %v231_v44  ;;  %v160_v44 = vsub.s32 2, %v66_v34 }
  0x2a   :  { %131 = vmatpush2.msra.mxu0 %v53_v41  ;;  %365 = vmatprep.subr.mxu1 %v454_v0  ;;  %v150_v41 = vsub.s32 1, %v66_v34 }
  0x2b   :  { %132 = vmatprep.subr.mxu0 %v454_v0  ;;  %366 = vmatpush2.msra.mxu1 %v230_v46 }
  0x2c   :  { %133 = vmatpush2.msra.mxu0 %v52_v43  ;;  %367 = vmatprep.subr.mxu1 %v454_v0  ;;  %v151_v43 = vrot.slane %v58_v37, %v150_v41 }
  0x2d   :  { %134 = vmatprep.subr.mxu0 %v454_v0  ;;  %368 = vmatpush2.msra.mxu1 %v229_v48  ;;  %v161_v48 = vrot.slane %v58_v37, %v160_v44 }
  0x2e   :  { %135 = vmatpush2.msra.mxu0 %v51_v45  ;;  %369 = vmatprep.subr.mxu1 %v454_v0 }
  0x2f   :  { %136 = vmatprep.subr.mxu0 %v454_v0  ;;  %370 = vmatpush2.msra.mxu1 %v228_v53 }
  0x30   :  { %137 = vmatpush2.msra.mxu0 %v50_v47  ;;  %371 = vmatprep.subr.mxu1 %v454_v0 }
  0x31   :  { %139 = vmatmul.mubr.f32.vlgmr.msra.gmra.mxu0 %v32_v49  ;;  %410 = vmatprep.subr.mxu0 %v207_v50 }
  0x32   :  { %411 = vmatpush3.msra.mxu0 %v191_v51  ;;  %372 = vmatpush2.msra.mxu1 %v227_v56  ;;  %v408_v56 = vld [vmem:[%s851_s8] ss:$0 sm:$0xff] }
  0x33   :  { %412 = vmatprep.subr.mxu0 %v206_v52  ;;  %373 = vmatprep.subr.mxu1 %v454_v0 }
  0x34   :  { %413 = vmatpush3.msra.mxu0 %v190_v54  ;;  %309 = vmatprep.mubr.f32.mxu0 %v173_v59  ;;  %v407_v54 = vld [vmem:[%s850_s7] ss:$0 sm:$0xff] }
  0x35   :  { %414 = vmatprep.subr.mxu0 %v205_v55  ;;  %374 = vmatpush2.msra.mxu1 %v226_v61 }
  0x36   :  { %415 = vmatpush3.msra.mxu0 %v189_v57  ;;  %375 = vmatprep.subr.mxu1 %v454_v0 }
  0x37   :  { %416 = vmatprep.subr.mxu0 %v204_v58  ;;  %376 = vmatpush2.msra.mxu1 %v225_v1 }
  0x38   :  { %417 = vmatpush3.msra.mxu0 %v188_v60  ;;  %377 = vmatprep.subr.mxu1 %v454_v0  ;;  %v199_v0 = vld [vmem:[%s844_s6 + $0xb8] sm:$0xff] }
  0x39   :  { %418 = vmatprep.subr.mxu0 %v203_v62  ;;  %378 = vmatpush2.msra.mxu1 %v224_v5 }
  0x3a   :  { %419 = vmatpush3.msra.mxu0 %v187_v63  ;;  %409 = vmatprep.mubr.msk.f32.mxu1 %vm241_vm1, %v175_v7 }
  0x3b   :  { %420 = vmatprep.subr.mxu0 %v202_v2  ;;  %380 = vmatmul.mubr.f32.vlgmr.msra.gmra.mxu1 %v174_v9 }
  0x3c   :  { %421 = vmatpush3.msra.mxu0 %v186_v4  ;;  %62 = vperm.xlu0 %449, %v59_v11  }
  0x3d   :  { %422 = vmatprep.subr.mxu0 %v201_v6  ;;  %155 = vperm.xlu1 %451, %v59_v11  }
  0x3e   :  { %423 = vmatpush3.msra.mxu0 %v185_v8 }
  0x3f   :  { %424 = vmatprep.subr.mxu0 %v200_v10 }
  0x40   :  { %425 = vmatpush3.msra.mxu0 %v184_v12  ;;  %450 = vset.pattern.permute.xlu0 %v457_v18 }
  0x41   :  { %426 = vmatprep.subr.mxu0 %v199_v0  ;;  %145 = vperm.xlu0 %450, %v59_v11  }
  0x42   :  { %427 = vmatpush3.msra.mxu0 %v183_v13  ;;  %452 = vset.pattern.permute.xlu1 %v455_v3 }
  0x43   :  { %428 = vmatprep.subr.mxu0 %v198_v14  ;;  %388 = vperm.xlu1 %452, %v385_v19  }
  0x44   :  { %429 = vmatpush3.msra.mxu0 %v182_v15 }
  0x45   :  { %430 = vmatprep.subr.mxu0 %v197_v16  ;;  %453 = vset.pattern.permute.xlu0 %v455_v3  ;;  %v192_v3 = vld [vmem:[%s844_s6 + $0x80] sm:$0xff] }
  0x46   :  { %431 = vmatpush3.msra.mxu0 %v181_v17 }
  0x47   :  { %432 = vmatprep.subr.mxu0 %v196_v20  ;;  %395 = vperm.xlu1 %452, %v392_v23  }
  0x48   :  { %433 = vmatpush3.msra.mxu0 %v180_v21 }
  0x49   :  { %434 = vmatprep.subr.mxu0 %v195_v22 }
  0x4a   :  { %435 = vmatpush3.msra.mxu0 %v179_v24 }
  0x4b   :  { %436 = vmatprep.subr.mxu0 %v194_v25 }
  0x4c   :  { %437 = vmatpush3.msra.mxu0 %v178_v26 }
  0x4d   :  { %438 = vmatprep.subr.mxu0 %v193_v27 }
  0x4e   :  { %439 = vmatpush3.msra.mxu0 %v177_v28 }
  0x4f   :  { %440 = vmatprep.subr.mxu0 %v192_v3 }
  0x50   :  { %441 = vmatpush3.msra.mxu0 %v176_v29 }
  0x51   :  { %310 = vmatmul.mubr.f32.vlgmr.msra.gmra.mxu0 %v172_v30 }
  0xb7   :  { %v63_v39 = vpop.permute.xlu0 %62 }
  0xb8   :  { %v69_v42 = vmul.f32 %v68_v40, %v63_v39  ;;  %v156_v49 = vpop.permute.xlu1 %155 }
  0xb9   :  { %v162_v51 = vmul.f32 %v161_v48, %v156_v49 }
  0xbc   :  { %v146_v45 = vpop.permute.xlu0 %145 }
  0xbd   :  { %v152_v47 = vmul.f32 %v151_v43, %v146_v45 }
  0xbe   :  { %v389_v58 = vpop.permute.xlu1 %388 }
  0xc2   :  { %v396_v62 = vpop.permute.xlu1 %395 }
  0xf1   :  { %v140_v31 = vpop.f32.mrf.mxu0 }
  0xf2   :  { %v141_v46 = vadd.f32 %v140_v31, %v69_v42 }
  0xf3   :  { %v142_v32 = vpop.f32.mrf.mxu0 }
  0xf4   :  { %v153_v50 = vadd.f32 %v152_v47, %v141_v46 }
  0xf6   :  { %v163_v53 = vadd.f32 %v162_v51, %v153_v50 }
  0xf8   :  { %v171_v59 = vadd.f32 %v407_v54, %v163_v53 }
  0xfa   :  { %v391_v63 = vmul.f32 %v389_v58, %v171_v59 }
  0xfb   :  { %v381_v36 = vpop.f32.mrf.mxu1 }
  0xfd   :  { %v383_v38 = vpop.f32.mrf.mxu1 }
 0x111   :  { %v442_v52 = vpop.f32.mrf.mxu0 }
 0x113   :  { %v443_v55 = vpop.f32.mrf.mxu0 }
 0x114   :  { %v444_v57 = vadd.f32 %v443_v55, %v442_v52 }
 0x116   :  { %v312_v60 = vadd.f32 %v444_v57, %v408_v56 }
 0x118   :  { %v382_v61 = vadd.f32 %v381_v36, %v312_v60 }
 0x11a   :  { %v398_v1 = vmul.f32 %v396_v62, %v382_v61 }
 0x11c   :  { %v399_v2 = vadd.f32 %v398_v1, %v391_v63 }
 0x11e   :  { %401 = vst.msk [vmem:[%s852_s9] sm:$0xff] %vm400_vm2, %v399_v2 }

</bundles_post_ra>
